<compile_context>
chip_gen: v6e
topology: v6e:2x2x1
jax: 0.10.0
libtpu: 0.0.40
codegen_flags: <defaults>
</compile_context>

<pallas_src>
import jax
import jax.numpy as jnp
from jax.experimental import pallas as pl
from jax.experimental.pallas import tpu as pltpu


def _mlp_kernel(x_ref, w1_ref, b1_ref, w2_ref, b2_ref, o_ref):
    # x_ref : (8, TB)  features on sublanes, batch on lanes (lane-dense)
    # w1_ref: (12, 8)  = w1.T        b1_ref: (12, 1)
    # w2_ref: (2, 12)  = w2.T        b2_ref: (2, 1)
    # o_ref : (2, TB)
    h = jnp.dot(w1_ref[...], x_ref[...], preferred_element_type=jnp.float32)
    h = jnp.maximum(h + b1_ref[...], 0.0)                 # bias + ReLU (VPU filler)
    y = jnp.dot(w2_ref[...], h, preferred_element_type=jnp.float32) + b2_ref[...]
    o_ref[...] = y.astype(o_ref.dtype)


def _round_up(x, m):
    return -(-x // m) * m


def _choose_tile(B, tb_cap=32768):
    # Enough grid steps to stay under tb_cap; at least 2 steps (so v7x megacore
    # gets both TCs) once B is large enough to fill two >=128-lane tiles.
    n_steps = max(1, -(-B // tb_cap))
    if B >= 256 and n_steps < 2:
        n_steps = 2
    return _round_up(-(-B // n_steps), 128)


def move_receiver_dqn(x, w1, b1, w2, b2, *, tb=None):
    """x: (B, 8) f32; w1: (8, 12); b1: (12,); w2: (12, 2); b2: (2,). -> (B, 2)."""
    B = x.shape[0]
    dt = jnp.float32

    if tb is None:
        tb = _choose_tile(B)
    assert tb % 128 == 0 and tb >= 128
    num_tiles = -(-B // tb)
    b_pad = num_tiles * tb

    # Lane-dense layout: batch on the lane (last) axis; transpose + pad is
    # wrapper-side layout plumbing only.
    # TODO(synk): push this (B,8)->(8,B) transpose upstream to x's producer.
    x_t = x.astype(dt).T                                       # (8, B)
    if b_pad > B:
        x_t = jnp.pad(x_t, ((0, 0), (0, b_pad - B)))           # (8, b_pad)

    w1_t = w1.astype(dt).T                                     # (12, 8)
    b1_c = b1.astype(dt).reshape(12, 1)
    w2_t = w2.astype(dt).T                                     # (2, 12)
    b2_c = b2.astype(dt).reshape(2, 1)

    cost = pl.CostEstimate(
        flops=(2 * (8 * 12 + 12 * 2) + 3 * 12 + 2) * b_pad,
        transcendentals=0,
        bytes_accessed=(8 + 2) * 4 * b_pad + 4 * (12 * 8 + 12 + 2 * 12 + 2),
    )

    y_t = pl.pallas_call(
        _mlp_kernel,
        out_shape=jax.ShapeDtypeStruct((2, b_pad), dt),
        grid=(num_tiles,),
        in_specs=[
            pl.BlockSpec((8, tb), lambda i: (0, i)),     # batch tile (lane-dense)
            pl.BlockSpec((12, 8), lambda i: (0, 0)),     # VMEM-resident weights
            pl.BlockSpec((12, 1), lambda i: (0, 0)),
            pl.BlockSpec((2, 12), lambda i: (0, 0)),
            pl.BlockSpec((2, 1), lambda i: (0, 0)),
        ],
        out_specs=pl.BlockSpec((2, tb), lambda i: (0, i)),
        compiler_params=pltpu.CompilerParams(
            dimension_semantics=("parallel",),
        ),
        cost_estimate=cost,
    )(x_t, w1_t, b1_c, w2_t, b2_c)

    # (2, B) -> (B, 2) to match the PyTorch output layout. Only 2 rows; drop
    # this if a downstream consumer can accept the (2, B) layout directly.
    return y_t[:, :B].T


def _reference(x, w1, b1, w2, b2):
    h = jnp.maximum(x @ w1 + b1, 0.0)
    return h @ w2 + b2


if __name__ == "__main__":
    key = jax.random.PRNGKey(0)
    kx, k1, kb1, k2, kb2 = jax.random.split(key, 5)

    # Deterministic synthetic parameters (PyTorch-like uniform init bounds).
    bound1 = 1.0 / jnp.sqrt(8.0)
    w1 = jax.random.uniform(k1, (8, 12), minval=-bound1, maxval=bound1,
                            dtype=jnp.float32)
    b1 = jax.random.uniform(kb1, (12,), minval=-bound1, maxval=bound1,
                            dtype=jnp.float32)
    bound2 = 1.0 / jnp.sqrt(12.0)
    w2 = jax.random.uniform(k2, (12, 2), minval=-bound2, maxval=bound2,
                            dtype=jnp.float32)
    b2 = jax.random.uniform(kb2, (2,), minval=-bound2, maxval=bound2,
                            dtype=jnp.float32)

    # Small batch (single 128-lane tile).
    B = 8
    x = jax.random.normal(kx, (B, 8), dtype=jnp.float32)
    out = jax.block_until_ready(move_receiver_dqn(x, w1, b1, w2, b2))
    ref = _reference(x, w1, b1, w2, b2)
    assert out.shape == (B, 2)
    assert jnp.allclose(out, ref, atol=1e-5, rtol=1e-5)

    # Non-multiple-of-tile batch, default adaptive tiling (2 grid steps + pad).
    B2 = 300
    x2 = jax.random.normal(kx, (B2, 8), dtype=jnp.float32)
    out2 = jax.block_until_ready(move_receiver_dqn(x2, w1, b1, w2, b2))
    ref2 = _reference(x2, w1, b1, w2, b2)
    assert out2.shape == (B2, 2)
    assert jnp.allclose(out2, ref2, atol=1e-5, rtol=1e-5)

    # Same batch with an explicit small tile to exercise a longer pipelined grid.
    out3 = jax.block_until_ready(move_receiver_dqn(x2, w1, b1, w2, b2, tb=128))
    assert out3.shape == (B2, 2)
    assert jnp.allclose(out3, ref2, atol=1e-5, rtol=1e-5)

    print("KERNEL_OK")
</pallas_src>

<mosaic_0001>
module attributes {stable_mosaic.version = 11 : i64} {
  func.func @_mlp_kernel(%arg0: i32, %arg1: memref<8x128xf32, #tpu.memory_space<vmem>>, %arg2: memref<12x8xf32, #tpu.memory_space<vmem>>, %arg3: memref<12x1xf32, #tpu.memory_space<vmem>>, %arg4: memref<2x12xf32, #tpu.memory_space<vmem>>, %arg5: memref<2x1xf32, #tpu.memory_space<vmem>>, %arg6: memref<2x128xf32, #tpu.memory_space<vmem>>) attributes {dimension_semantics = [#tpu.dimension_semantics<parallel>], iteration_bounds = array<i64: 1>, scalar_prefetch = 0 : i64, scratch_operands = 0 : i64, tpu.core_type = #tpu.core_type<tc>, window_params = [{transform_indices = @transform_0, window_bounds = array<i64: 8, 128>}, {pipeline_mode = #tpu.pipeline_mode<synchronous>, transform_indices = @transform_1, window_bounds = array<i64: 12, 8>}, {pipeline_mode = #tpu.pipeline_mode<synchronous>, transform_indices = @transform_2, window_bounds = array<i64: 12, 1>}, {pipeline_mode = #tpu.pipeline_mode<synchronous>, transform_indices = @transform_3, window_bounds = array<i64: 2, 12>}, {pipeline_mode = #tpu.pipeline_mode<synchronous>, transform_indices = @transform_4, window_bounds = array<i64: 2, 1>}, {transform_indices = @transform_5, window_bounds = array<i64: 2, 128>}]} {
    %c0 = arith.constant 0 : index
    %c0_0 = arith.constant 0 : index
    %0 = vector.load %arg2[%c0, %c0_0] : memref<12x8xf32, #tpu.memory_space<vmem>>, vector<12x8xf32>
    %c0_1 = arith.constant 0 : index
    %c0_2 = arith.constant 0 : index
    %1 = vector.load %arg1[%c0_1, %c0_2] : memref<8x128xf32, #tpu.memory_space<vmem>>, vector<8x128xf32>
    %cst = arith.constant dense<0.000000e+00> : vector<12x128xf32>
    %2 = tpu.matmul %0, %1, %cst {dimension_numbers = #tpu.dot_dimension_numbers<[1], [0], [0], [1], [0, 0, 1, 1], [], []>} : vector<12x8xf32>, vector<8x128xf32>, vector<12x128xf32> -> vector<12x128xf32>
    %c0_3 = arith.constant 0 : index
    %c0_4 = arith.constant 0 : index
    %3 = vector.load %arg3[%c0_3, %c0_4] : memref<12x1xf32, #tpu.memory_space<vmem>>, vector<12x1xf32>
    %4 = vector.broadcast %3 : vector<12x1xf32> to vector<12x128xf32>
    %5 = arith.addf %2, %4 : vector<12x128xf32>
    %cst_5 = arith.constant 0.000000e+00 : f32
    %6 = vector.broadcast %cst_5 : f32 to vector<12x128xf32>
    %7 = arith.maximumf %5, %6 : vector<12x128xf32>
    %c0_6 = arith.constant 0 : index
    %c0_7 = arith.constant 0 : index
    %8 = vector.load %arg4[%c0_6, %c0_7] : memref<2x12xf32, #tpu.memory_space<vmem>>, vector<2x12xf32>
    %cst_8 = arith.constant dense<0.000000e+00> : vector<2x128xf32>
    %9 = tpu.matmul %8, %7, %cst_8 {dimension_numbers = #tpu.dot_dimension_numbers<[1], [0], [0], [1], [0, 0, 1, 1], [], []>} : vector<2x12xf32>, vector<12x128xf32>, vector<2x128xf32> -> vector<2x128xf32>
    %c0_9 = arith.constant 0 : index
    %c0_10 = arith.constant 0 : index
    %10 = vector.load %arg5[%c0_9, %c0_10] : memref<2x1xf32, #tpu.memory_space<vmem>>, vector<2x1xf32>
    %11 = vector.broadcast %10 : vector<2x1xf32> to vector<2x128xf32>
    %12 = arith.addf %9, %11 : vector<2x128xf32>
    %c0_11 = arith.constant 0 : index
    %c0_12 = arith.constant 0 : index
    %13 = vector.load %arg6[%c0_11, %c0_12] : memref<2x128xf32, #tpu.memory_space<vmem>>, vector<2x128xf32>
    tpu.vector_store %arg6[%c0_11, %c0_12], %12 {strides = array<i32>} : memref<2x128xf32, #tpu.memory_space<vmem>>, vector<2x128xf32>,
    return
  }
  func.func @transform_0(%arg0: i32) -> (i32, i32) {
    %c0_i32 = arith.constant 0 : i32
    %c0_i32_0 = arith.constant 0 : i32
    return %c0_i32, %arg0 : i32, i32
  }
  func.func @transform_1(%arg0: i32) -> (i32, i32) {
    %c0_i32 = arith.constant 0 : i32
    %c0_i32_0 = arith.constant 0 : i32
    %c0_i32_1 = arith.constant 0 : i32
    return %c0_i32, %c0_i32_0 : i32, i32
  }
  func.func @transform_2(%arg0: i32) -> (i32, i32) {
    %c0_i32 = arith.constant 0 : i32
    %c0_i32_0 = arith.constant 0 : i32
    %c0_i32_1 = arith.constant 0 : i32
    return %c0_i32, %c0_i32_0 : i32, i32
  }
  func.func @transform_3(%arg0: i32) -> (i32, i32) {
    %c0_i32 = arith.constant 0 : i32
    %c0_i32_0 = arith.constant 0 : i32
    %c0_i32_1 = arith.constant 0 : i32
    return %c0_i32, %c0_i32_0 : i32, i32
  }
  func.func @transform_4(%arg0: i32) -> (i32, i32) {
    %c0_i32 = arith.constant 0 : i32
    %c0_i32_0 = arith.constant 0 : i32
    %c0_i32_1 = arith.constant 0 : i32
    return %c0_i32, %c0_i32_0 : i32, i32
  }
  func.func @transform_5(%arg0: i32) -> (i32, i32) {
    %c0_i32 = arith.constant 0 : i32
    %c0_i32_0 = arith.constant 0 : i32
    return %c0_i32, %arg0 : i32, i32
  }
}

</mosaic_0001>

<bundles_post_ra>
// kernel: tpu_custom_call.1
= control target key start
LH: loop header
LB: loop body
LE: loop exit
PB: predicated region body
PF: predicated region fallthrough
CT: control target
= control target key end

     0   :  { %vm36_vm0 = vcmask 64512   ;;  %s328_s0 = inlined_call_operand.vmem [shape: f32[8,128], index: 0, kind: input, shape index: {}]   ;;  %s329_s1 = inlined_call_operand.vmem [shape: f32[12,8], index: 1, kind: input, shape index: {}]   ;;  %s330_s2 = inlined_call_operand.vmem [shape: f32[12,1], index: 2, kind: input, shape index: {}]   ;;  %s331_s3 = inlined_call_operand.vmem [shape: f32[2,12], index: 3, kind: input, shape index: {}]   ;;  %s332_s4 = inlined_call_operand.vmem [shape: f32[2,1], index: 4, kind: input, shape index: {}]   ;;  %s333_s5 = inlined_call_operand.hbm [shape: f32[2,128], index: 5, kind: output, shape index: {}]  }
   0x1   :  { %v23_v0 = vld [vmem:[%s328_s0] sm:$0xff]  ;;  %v22_v2 = vld [vmem:[%s329_s1 + $0x8] sm:$0xf] }
   0x2   :  { %v21_v1 = vld [vmem:[%s329_s1] sm:$0xff]  ;;  %230 = vmatprep.subr.mxu0 %v23_v0  ;;  %v25_v3 = vld [vmem:[%s330_s2 + $0x8] sm:$0xf] }
   0x3   :  { %232 = vmatprep.mubr.msk.f32.mxu0 %vm36_vm0, %v21_v1 }
   0x4   :  { %10 = vsyncpa [#allocation3], 0  ;;  %231 = vmatpush3.msra.mxu0 %v23_v0  ;;  %v270_v4 = vmov 0   ;;  %v24_v5 = vld [vmem:[%s330_s2] sm:$0xff]  ;;  %v271_v6 = vmov 0.0   ;;  %vm272_vm1 = vmmov 0  }
   0x5   :  { %246 = vset.pattern.permute.xlu0 %v270_v4  ;;  %233 = vmatmul.mubr.msk.f32.vlgmr.msra.gmra.mxu0 %vm36_vm0, %v22_v2  ;;  %v121_v7 = vld [vmem:[%s332_s4] sm:$0x3]  ;;  %vm131_vm2 = vcmask 1043456   ;;  %vm127_vm3 = vcmask 97280   ;;  %s273_s4 = smov [#allocation2]  }
   0x6   :  { %33 = vperm.xlu0 %246, %v25_v3   ;;  %247 = vset.pattern.permute.xlu1 %v270_v4  ;;  %v120_v16 = vld [vmem:[%s331_s3] sm:$0x3]  ;;  %s212_s29 = sshll.u32 %s273_s4, 4  ;;  %s213_s29 = int_to_ptr.vmem [resolvable:$true] %s212_s29 }
   0x7   :  { %235 = vmatprep.subr.mxu1 %v271_v6  ;;  %239 = vmatprep.mubr.msk.f32.mxu1 %vm272_vm1, %v271_v6  ;;  %s248_s30 = scalar_lea.vmem %s213_s29, 32  ;;  %p253_p1 = scmp.lt.s32.totalorder %s213_s29, %s213_s29 }
   0x8   :  { %124 = vperm.xlu1 %247, %v121_v7   ;;  %p249_p0 = scmp.ne.s32.totalorder %s213_s29, %s248_s30  ;;  %p254_p2 = scmp.lt.s32.totalorder %s248_s30, %s248_s30 }
   0xa   :  { %28 = vperm.xlu0 %246, %v24_v5   ;;  %p255_p3 = por %p254_p2, %p253_p1 }
   0xc   :  { %p256_p4 = pnand %p255_p3, %p249_p0 }
  0x81   :  { %v34_v8 = vpop.permute.xlu0 %33 }
  0x83   :  { %v125_v17 = vpop.permute.xlu1 %124 }
  0x85   :  { %v29_v11 = vpop.permute.xlu0 %28 }
  0xc5   :  { %v234_v9 = vpop.f32.mrf.mxu0 }
  0xc6   :  { %v115_v10 = vadd.f32 %v234_v9, %v34_v8 }
  0xc7   :  { %v109_v12 = vpop.f32.mrf.mxu0 }
  0xc8   :  { %v119_v13 = vmax.f32 %v115_v10, 0.0  ;;  %v110_v14 = vadd.f32 %v109_v12, %v29_v11 }
  0xca   :  { %v118_v15 = vmax.f32 %v110_v14, 0.0  ;;  %236 = vmatpush3.msk.msra.mxu1 %vm131_vm2, %v119_v13 }
  0xcb   :  { %237 = vmatprep.subr.mxu1 %v271_v6 }
  0xcc   :  { %238 = vmatpush3.msra.mxu1 %v118_v15 }
  0xcd   :  { %240 = vmatmul.mubr.msk.f32.vlgmr.msra.gmra.mxu1 %vm127_vm3, %v120_v16 }
 0x18d   :  { %v201_v18 = vpop.f32.mrf.mxu1 }
 0x18e   :  { %v202_v19 = vadd.f32 %v201_v18, %v125_v17 }
 0x18f   :  { %v241_v20 = vpop.f32.mrf.mxu1 }
 0x190   :  { %205 = vst [vmem:[#allocation2] sm:$0x3] %v202_v19 }
 0x191   :  { %259 = shalt.err (!%p256_p4)
}
 0x192   :  { %215 = dma.vmem_to_hbm [thread:$0]  %s213_s29, 32, %s333_s5, [#allocation3]  }
 0x193   :  { %268 = dma.done.wait [#allocation3], 32  }
 0x194   :  { %269 = vsyncadd [#allocation3], 4294967264 }
 0x195   :  { %219 = vsyncpa [#allocation3], 1 }

</bundles_post_ra>
